<compile_context>
chip_gen: v5e
topology: v5e:2x2
jax: 0.10.0
libtpu: 0.0.40
codegen_flags: <defaults>
</compile_context>

<pallas_src>
import functools

import jax
import jax.numpy as jnp
from jax.experimental import pallas as pl
from jax.experimental.pallas import tpu as pltpu

_EPS = 1e-6        # F.pairwise_distance default eps (added to the difference).
_LANE = 128
_SUBLANE = 8


def _is_v7() -> bool:
    """Detect a 2-TensorCore (v7x-class) chip; default to single-core."""
    try:
        kind = jax.devices()[0].device_kind.lower()
    except Exception:
        return False
    return ("v7" in kind) or kind.endswith("7x")


def _contrastive_kernel(o1_ref, o2_ref, lbl_ref, out_ref, *,
                        margin, b_valid, b_padded, tile_rows, tiles_per_core,
                        two_axes):
    if two_axes:
        i = pl.program_id(1)                              # batch-reduction axis
        tile_idx = pl.program_id(0) * tiles_per_core + i  # global tile index
    else:
        i = pl.program_id(0)
        tile_idx = i

    @pl.when(i == 0)
    def _init():
        out_ref[...] = jnp.zeros_like(out_ref)

    o1 = o1_ref[...].astype(jnp.float32)                  # (TB, D), no lane padding
    o2 = o2_ref[...].astype(jnp.float32)
    diff = o1 - o2 + _EPS
    sq_dist = jnp.sum(diff * diff, axis=-1, keepdims=True)   # (TB, 1)
    dist = jnp.sqrt(sq_dist)                                  # EUP slot
    lbl = lbl_ref[...].astype(jnp.float32)                    # (TB, 1)
    hinge = jnp.maximum(margin - dist, 0.0)
    per_pair = (1.0 - lbl) * sq_dist + lbl * (hinge * hinge)  # (TB, 1)

    # Broadcast the scalar partial over the resident (8, 128) block so the
    # accumulation stays a pure vector op; element [c*8, 0] is read back outside.
    if b_padded:
        has_pad = (tile_idx + 1) * tile_rows > b_valid

        @pl.when(has_pad)
        def _masked_tail():          # only padded tiles pay the row mask
            row = (jax.lax.broadcasted_iota(jnp.int32, per_pair.shape, 0)
                   + tile_idx * tile_rows)
            masked = jnp.where(row < b_valid, per_pair, 0.0)
            out_ref[...] = out_ref[...] + jnp.sum(masked)

        @pl.when(jnp.logical_not(has_pad))
        def _full_tile():
            out_ref[...] = out_ref[...] + jnp.sum(per_pair)
    else:
        out_ref[...] = out_ref[...] + jnp.sum(per_pair)


def contrastive_loss(output1, output2, label, margin=2.0):
    """output1, output2: (B, D); label: (B, 1). Returns scalar f32 loss."""
    B, D = output1.shape
    assert output2.shape == (B, D)
    assert label.shape == (B, 1)

    is_v7 = _is_v7()
    num_cores = 2 if is_v7 else 1     # 2 TCs only on v7x; 1 on v5e/v6e

    dtype_bytes = jnp.dtype(output1.dtype).itemsize
    # VMEM lane footprint of one input row (lanes pad to 128 inside VMEM even
    # though HBM/DMA only move the real D columns).
    d_lanes = ((D + _LANE - 1) // _LANE) * _LANE
    vmem_row_bytes = d_lanes * dtype_bytes

    # Batch tile: ~6 MiB per input tile on 128 MiB-VMEM parts, ~2 MiB on v7x;
    # multiple of 8; capped so the lane-padded (tb, 1) label block stays small;
    # no over-padding of tiny batches.
    target_tile_bytes = (2 << 20) if is_v7 else (6 << 20)
    tb = (target_tile_bytes // max(vmem_row_bytes, 1)) // _SUBLANE * _SUBLANE
    tb = max(_SUBLANE, min(int(tb), 4096))
    per_core_rows = -(-B // num_cores)
    tb = min(tb, ((per_core_rows + _SUBLANE - 1) // _SUBLANE) * _SUBLANE)
    tiles_per_core = -(-B // (num_cores * tb))
    Bp = num_cores * tiles_per_core * tb

    o1, o2, lbl = output1, output2, label
    if Bp != B:                        # batch padding only; no feature padding
        o1 = jnp.pad(o1, ((0, Bp - B), (0, 0)))
        o2 = jnp.pad(o2, ((0, Bp - B), (0, 0)))
        lbl = jnp.pad(lbl, ((0, Bp - B), (0, 0)))

    two_axes = num_cores > 1
    if two_axes:
        grid = (num_cores, tiles_per_core)
        in_map = lambda c, i: (c * tiles_per_core + i, 0)
        out_map = lambda c, i: (c, 0)
        if hasattr(pltpu, "CORE_PARALLEL"):
            # Real 2-TC sharding on v7x (plain "parallel" doesn't change codegen).
            dim_sems = (pltpu.CORE_PARALLEL, getattr(pltpu, "ARBITRARY", "arbitrary"))
        else:
            dim_sems = ("parallel", "arbitrary")
    else:
        grid = (tiles_per_core,)
        in_map = lambda i: (i, 0)
        out_map = lambda i: (0, 0)
        dim_sems = ("arbitrary",)

    kernel = functools.partial(
        _contrastive_kernel,
        margin=float(margin),
        b_valid=B, b_padded=(Bp != B),
        tile_rows=tb, tiles_per_core=tiles_per_core,
        two_axes=two_axes,
    )

    # Double-buffered o1/o2 tiles + lane-padded label tiles + resident output
    # + headroom. Cap: 48 MiB on v7x (64 MiB VMEM/TC), 96 MiB on v5e/v6e.
    vmem_cap = (48 << 20) if is_v7 else (96 << 20)
    vmem_bytes = (2 * 2 * tb * vmem_row_bytes            # o1/o2, 2 buffers each
                  + 2 * tb * _LANE * 4                   # label, lane-padded, 2 bufs
                  + num_cores * _SUBLANE * _LANE * 4     # resident output
                  + (4 << 20))                           # headroom
    vmem_limit = int(min(max(vmem_bytes, 16 << 20), vmem_cap))

    cost = pl.CostEstimate(
        flops=int(4 * Bp * D + 10 * Bp),
        transcendentals=int(Bp),
        bytes_accessed=int(2 * Bp * D * dtype_bytes
                           + Bp * jnp.dtype(lbl.dtype).itemsize
                           + num_cores * _SUBLANE * _LANE * 4),
    )

    out = pl.pallas_call(
        kernel,
        out_shape=jax.ShapeDtypeStruct((num_cores * _SUBLANE, _LANE), jnp.float32),
        grid_spec=pltpu.PrefetchScalarGridSpec(
            num_scalar_prefetch=0,
            grid=grid,
            in_specs=[
                pl.BlockSpec((tb, D), in_map),   # last dim == full dim: no padding
                pl.BlockSpec((tb, D), in_map),
                pl.BlockSpec((tb, 1), in_map),
            ],
            out_specs=pl.BlockSpec((_SUBLANE, _LANE), out_map),
        ),
        compiler_params=pltpu.CompilerParams(
            dimension_semantics=dim_sems,
            vmem_limit_bytes=vmem_limit,
        ),
        cost_estimate=cost,
    )(o1, o2, lbl)

    partials = out[::_SUBLANE, 0]            # per-core partial sums
    return jnp.sum(partials) / jnp.float32(B)


if __name__ == "__main__":
    key = jax.random.PRNGKey(0)
    k1, k2, k3 = jax.random.split(key, 3)

    B, D = 8, 32
    output1 = jax.random.normal(k1, (B, D), dtype=jnp.float32)
    output2 = jax.random.normal(k2, (B, D), dtype=jnp.float32)
    label = jax.random.bernoulli(k3, 0.5, (B, 1)).astype(jnp.float32)

    loss = contrastive_loss(output1, output2, label, margin=2.0)
    jax.block_until_ready(loss)

    # Pure-JAX reference (same math as the PyTorch module).
    diff = output1 - output2 + _EPS
    d = jnp.sqrt(jnp.sum(diff * diff, axis=-1, keepdims=True))
    ref = jnp.mean((1.0 - label) * d ** 2 + label * jnp.clip(2.0 - d, 0.0) ** 2)
    assert jnp.allclose(loss, ref, rtol=1e-5, atol=1e-5), (loss, ref)

    print("KERNEL_OK")
</pallas_src>

<mosaic_0001>
module attributes {stable_mosaic.version = 11 : i64} {
  func.func @_contrastive_kernel(%arg0: i32, %arg1: memref<8x32xf32, #tpu.memory_space<vmem>>, %arg2: memref<8x32xf32, #tpu.memory_space<vmem>>, %arg3: memref<8x1xf32, #tpu.memory_space<vmem>>, %arg4: memref<8x128xf32, #tpu.memory_space<vmem>>) attributes {dimension_semantics = [#tpu.dimension_semantics<arbitrary>], iteration_bounds = array<i64: 1>, scalar_prefetch = 0 : i64, scratch_operands = 0 : i64, tpu.core_type = #tpu.core_type<tc>, window_params = [{transform_indices = @transform_0, window_bounds = array<i64: 8, 32>}, {transform_indices = @transform_1, window_bounds = array<i64: 8, 32>}, {transform_indices = @transform_2, window_bounds = array<i64: 8, 1>}, {pipeline_mode = #tpu.pipeline_mode<synchronous>, transform_indices = @transform_3, window_bounds = array<i64: 8, 128>}]} {
    %c0_i32 = arith.constant 0 : i32
    %0 = arith.cmpi eq, %arg0, %c0_i32 : i32
    %1 = arith.extui %0 : i1 to i32
    %c0_i32_0 = arith.constant 0 : i32
    %2 = arith.cmpi ne, %1, %c0_i32_0 : i32
    scf.if %2 {
      %cst_15 = arith.constant 0.000000e+00 : f32
      %31 = vector.broadcast %cst_15 : f32 to vector<8x128xf32>
      %c0_16 = arith.constant 0 : index
      %c0_17 = arith.constant 0 : index
      %32 = vector.load %arg4[%c0_16, %c0_17] : memref<8x128xf32, #tpu.memory_space<vmem>>, vector<8x128xf32>
      tpu.vector_store %arg4[%c0_16, %c0_17], %31 {strides = array<i32>} : memref<8x128xf32, #tpu.memory_space<vmem>>, vector<8x128xf32>,
    } else {
    }
    %c0 = arith.constant 0 : index
    %c0_1 = arith.constant 0 : index
    %3 = vector.load %arg1[%c0, %c0_1] : memref<8x32xf32, #tpu.memory_space<vmem>>, vector<8x32xf32>
    %c0_2 = arith.constant 0 : index
    %c0_3 = arith.constant 0 : index
    %4 = vector.load %arg2[%c0_2, %c0_3] : memref<8x32xf32, #tpu.memory_space<vmem>>, vector<8x32xf32>
    %5 = arith.subf %3, %4 : vector<8x32xf32>
    %cst = arith.constant 9.99999997E-7 : f32
    %6 = vector.broadcast %cst : f32 to vector<8x32xf32>
    %7 = arith.addf %5, %6 : vector<8x32xf32>
    %8 = arith.mulf %7, %7 : vector<8x32xf32>
    %cst_4 = arith.constant dense<0.000000e+00> : vector<8xf32>
    %9 = vector.multi_reduction <add>, %8, %cst_4 [1] : vector<8x32xf32> to vector<8xf32>
    %10 = vector.shape_cast %9 : vector<8xf32> to vector<8x1xf32>
    %11 = math.sqrt %10 : vector<8x1xf32>
    %c0_5 = arith.constant 0 : index
    %c0_6 = arith.constant 0 : index
    %12 = vector.load %arg3[%c0_5, %c0_6] : memref<8x1xf32, #tpu.memory_space<vmem>>, vector<8x1xf32>
    %cst_7 = arith.constant 2.000000e+00 : f32
    %13 = vector.broadcast %cst_7 : f32 to vector<8x1xf32>
    %14 = arith.subf %13, %11 : vector<8x1xf32>
    %cst_8 = arith.constant 0.000000e+00 : f32
    %15 = vector.broadcast %cst_8 : f32 to vector<8x1xf32>
    %16 = arith.maximumf %14, %15 : vector<8x1xf32>
    %cst_9 = arith.constant 1.000000e+00 : f32
    %17 = vector.broadcast %cst_9 : f32 to vector<8x1xf32>
    %18 = arith.subf %17, %12 : vector<8x1xf32>
    %19 = arith.mulf %18, %10 : vector<8x1xf32>
    %20 = arith.mulf %16, %16 : vector<8x1xf32>
    %21 = arith.mulf %12, %20 : vector<8x1xf32>
    %22 = arith.addf %19, %21 : vector<8x1xf32>
    %c0_10 = arith.constant 0 : index
    %c0_11 = arith.constant 0 : index
    %23 = vector.load %arg4[%c0_10, %c0_11] : memref<8x128xf32, #tpu.memory_space<vmem>>, vector<8x128xf32>
    %24 = vector.shape_cast %22 : vector<8x1xf32> to vector<1x8x1xf32>
    %cst_12 = arith.constant dense<0.000000e+00> : vector<1xf32>
    %25 = vector.multi_reduction <add>, %24, %cst_12 [1, 2] : vector<1x8x1xf32> to vector<1xf32>
    %26 = vector.shape_cast %25 : vector<1xf32> to vector<1x1x1xf32>
    %27 = vector.extract %26[0, 0, 0] : f32 from vector<1x1x1xf32>
    %28 = vector.broadcast %27 : f32 to vector<8x128xf32>
    %29 = arith.addf %23, %28 : vector<8x128xf32>
    %c0_13 = arith.constant 0 : index
    %c0_14 = arith.constant 0 : index
    %30 = vector.load %arg4[%c0_13, %c0_14] : memref<8x128xf32, #tpu.memory_space<vmem>>, vector<8x128xf32>
    tpu.vector_store %arg4[%c0_13, %c0_14], %29 {strides = array<i32>} : memref<8x128xf32, #tpu.memory_space<vmem>>, vector<8x128xf32>,
    return
  }
  func.func @transform_0(%arg0: i32) -> (i32, i32) {
    %c0_i32 = arith.constant 0 : i32
    %c0_i32_0 = arith.constant 0 : i32
    return %arg0, %c0_i32 : i32, i32
  }
  func.func @transform_1(%arg0: i32) -> (i32, i32) {
    %c0_i32 = arith.constant 0 : i32
    %c0_i32_0 = arith.constant 0 : i32
    return %arg0, %c0_i32 : i32, i32
  }
  func.func @transform_2(%arg0: i32) -> (i32, i32) {
    %c0_i32 = arith.constant 0 : i32
    %c0_i32_0 = arith.constant 0 : i32
    return %arg0, %c0_i32 : i32, i32
  }
  func.func @transform_3(%arg0: i32) -> (i32, i32) {
    %c0_i32 = arith.constant 0 : i32
    %c0_i32_0 = arith.constant 0 : i32
    %c0_i32_1 = arith.constant 0 : i32
    return %c0_i32, %c0_i32_0 : i32, i32
  }
}

</mosaic_0001>

<bundles_post_ra>
// kernel: tpu_custom_call.1
= control target key start
LH: loop header
LB: loop body
LE: loop exit
PB: predicated region body
PF: predicated region fallthrough
CT: control target
= control target key end

     0   :  { %8 = vsyncpa [#allocation3], 0  ;;  %s188_s0 = inlined_call_operand.vmem [shape: f32[8,32], index: 0, kind: input, shape index: {}]   ;;  %s189_s1 = inlined_call_operand.hbm [shape: f32[8,32], index: 1, kind: input, shape index: {}]   ;;  %s190_s2 = inlined_call_operand.vmem [shape: f32[8,1], index: 2, kind: input, shape index: {}]   ;;  %s191_s3 = inlined_call_operand.hbm [shape: f32[8,128], index: 3, kind: output, shape index: {}]  }
   0x1   :  { %9 = vsyncpa [#allocation4], 0  ;;  %s17_s14 = sshll.u32 %s189_s1, 4  ;;  %s154_s15 = smov [#allocation2]   ;;  %s18_s14 = int_to_ptr.hbm [resolvable:$true] %s17_s14 }
   0x2   :  { %s19_s16 = sshll.u32 %s154_s15, 4  ;;  %s20_s16 = int_to_ptr.vmem [resolvable:$true] %s19_s16 }
   0x3   :  { %22 = dma.hbm_to_vmem [thread:$0]  %s18_s14, 128, %s20_s16, [#allocation3]  }
   0x4   :  { %150 = dma.done.wait [#allocation3], 128  }
   0x5   :  { %151 = vsyncadd [#allocation3], 4294967168  ;;  %v34_v0 = vld [vmem:[%s188_s0] sm:$0xff]  ;;  %vm39_vm0 = vcmask 261120   ;;  %vm64_vm3 = vcmask 7168   ;;  %s155_s19 = smov [#allocation5]  }
   0x6   :  { %v35_v1 = vld [vmem:[#allocation2] sm:$0xff]  ;;  %s85_s22 = sshll.u32 %s191_s3, 4  ;;  %s86_s22 = int_to_ptr.hbm [resolvable:$true] %s85_s22 }
   0x7   :  { %v36_v2 = vsub.f32 %v34_v0, %v35_v1  ;;  %v55_v17 = vld [vmem:[%s190_s2] sm:$0xff]  ;;  %s83_s2 = sshll.u32 %s155_s19, 4  ;;  %s84_s2 = int_to_ptr.vmem [resolvable:$true] %s83_s2 }
   0x8   :  { %v58_v20 = vsub.f32 1.0, %v55_v17 }
   0x9   :  { %v37_v3 = vadd.f32 1e-06, %v36_v2 }
   0xb   :  { %v38_v4 = vmul.f32 %v37_v3, %v37_v3 }
   0xd   :  { %v40_v5 = vsel %vm39_vm0, %v38_v4, 0.0 }
   0xe   :  { %41 = vadd.xlane.f32.xlu0 %v40_v5 }
  0x81   :  { %v42_v6 = vpop.xlane.xlu0 %41 }
  0x82   :  { %100 = vrsqrt.f32 %v42_v6  ;;  %vm50_vm1 = vcmp.eq.f32.partialorder %v42_v6, inf  ;;  %v53_v14 = vand.u32 2147483648, %v42_v6  ;;  %vm52_vm2 = vcmp.eq.f32.partialorder %v42_v6, 0.0 }
  0x83   :  { %v59_v22 = vmul.f32 %v58_v20, %v42_v6 }
  0x88   :  { %v101_v7 = vpop.eup %100 }
  0x89   :  { %v44_v8 = vmul.f32 %v101_v7, %v42_v6 }
  0x8b   :  { %v45_v9 = vmul.f32 %v101_v7, %v44_v8 }
  0x8d   :  { %v46_v10 = vmul.f32 0.5, %v45_v9 }
  0x8f   :  { %v47_v11 = vsub.f32 1.5, %v46_v10 }
  0x91   :  { %v48_v12 = vmul.f32 %v101_v7, %v47_v11 }
  0x93   :  { %v49_v13 = vmul.f32 %v48_v12, %v42_v6 }
  0x95   :  { %v51_v15 = vsel %vm50_vm1, %v42_v6, %v49_v13 }
  0x96   :  { %v54_v16 = vsel %vm52_vm2, %v53_v14, %v51_v15 }
  0x97   :  { %v56_v18 = vsub.f32 2.0, %v54_v16 }
  0x99   :  { %v57_v19 = vmax.f32 %v56_v18, 0.0 }
  0x9b   :  { %v60_v21 = vmul.f32 %v57_v19, %v57_v19 }
  0x9d   :  { %v61_v23 = vmul.f32 %v60_v21, %v55_v17 }
  0x9f   :  { %v62_v24 = vadd.f32 %v61_v23, %v59_v22 }
  0xa1   :  { %v65_v25 = vsel %vm64_vm3, %v62_v24, 0.0 }
  0xa2   :  { %66 = vadd.xlane.f32.xlu0 %v65_v25 }
 0x115   :  { %v67_v26 = vpop.xlane.xlu0 %66 }
 0x116   :  { %v68_v27 = vrot.slane %v67_v26, 4 }
 0x118   :  { %v69_v28 = vadd.f32 %v68_v27, %v67_v26 }
 0x11a   :  { %v70_v29 = vrot.slane %v69_v28, 2 }
 0x11c   :  { %v71_v30 = vadd.f32 %v70_v29, %v69_v28 }
 0x11e   :  { %v72_v31 = vrot.slane %v71_v30, 1 }
 0x120   :  { %v73_v32 = vadd.f32 %v72_v31, %v71_v30 }
 0x122   :  { %95 = vpush %v73_v32 }
 0x153   :  { %s96_s23 = spop %95 }
 0x154   :  { %v75_v33 = vstv %s96_s23 }
 0x155   :  { %77 = vst [vmem:[#allocation5] sm:$0xff] %v75_v33 }
 0x156   :  { %88 = dma.vmem_to_hbm [thread:$0]  %s84_s2, 128, %s86_s22, [#allocation4]  }
 0x157   :  { %152 = dma.done.wait [#allocation4], 128  }
 0x158   :  { %153 = vsyncadd [#allocation4], 4294967168 }
 0x159   :  { %93 = vsyncpa [#allocation3], 1 }
 0x15a   :  { %94 = vsyncpa [#allocation4], 1 }

</bundles_post_ra>
